<compile_context>
chip_gen: v7x
topology: tpu7x:2x2x1
jax: 0.10.0
libtpu: 0.0.40
codegen_flags: <defaults>
</compile_context>

<pallas_src>
import functools

import jax
import jax.numpy as jnp
from jax import lax
from jax.experimental import pallas as pl
from jax.experimental.pallas import tpu as pltpu


def _ae_hard_kernel(*refs, num_layers, step, threshold, twosided, fold_a, use_bf16):
    """One grid point = one batch tile; W (and A) are resident VMEM constants.

    fold_a=True : refs = (w_ref, a_ref, x_ref, xhat_ref, z_ref)
    fold_a=False: refs = (w_ref,        x_ref, xhat_ref, z_ref)
    """
    if fold_a:
        w_ref, a_ref, x_ref, xhat_ref, z_ref = refs
    else:
        w_ref, x_ref, xhat_ref, z_ref = refs

    W = w_ref[...]                       # (m, p) f32
    X = x_ref[...]                       # (tb, m) f32
    tb = X.shape[0]
    p = W.shape[1]

    mm_dtype = jnp.bfloat16 if use_bf16 else jnp.float32
    Wm = W.astype(mm_dtype)

    def nonlin(z):
        if twosided:
            # ht(|z|) * sign(z)  ==  z where |z| > threshold else 0 (strict >)
            return jnp.where(jnp.abs(z) > threshold, z, 0.0)
        # torch.nn.Threshold(threshold, 0): z if z > threshold else 0 (strict >)
        return jnp.where(z > threshold, z, 0.0)

    if num_layers <= 0:
        Z = jnp.zeros((tb, p), jnp.float32)
    else:
        # C = step * (X @ W); with Z0 = 0 the first layer is Z1 = nonlin(C).
        C = step * jnp.dot(X.astype(mm_dtype), Wm,
                           preferred_element_type=jnp.float32)          # (tb, p)
        Z = nonlin(C)

        if num_layers > 1:
            if fold_a:
                A = a_ref[...].astype(mm_dtype)                          # (p, p)

                def body(_, Zk):
                    return nonlin(
                        jnp.dot(Zk.astype(mm_dtype), A,
                                preferred_element_type=jnp.float32) + C)
            else:
                def body(_, Zk):
                    # R = Z @ W^T via transposed-contraction dims (no vxpose).
                    R = lax.dot_general(Zk.astype(mm_dtype), Wm,
                                        (((1,), (1,)), ((), ())),
                                        preferred_element_type=jnp.float32)  # (tb, m)
                    G = jnp.dot(R.astype(mm_dtype), Wm,
                                preferred_element_type=jnp.float32)          # (tb, p)
                    return nonlin(Zk - step * G + C)

            unroll = min(num_layers - 1, 8)      # cap vreg pressure
            Z = lax.fori_loop(0, num_layers - 1, body, Z, unroll=unroll)

    z_ref[...] = Z
    # decode: xhat = Z @ W^T (transposed-contraction dot_general, lane-dense store)
    xhat_ref[...] = lax.dot_general(Z.astype(mm_dtype), Wm,
                                    (((1,), (1,)), ((), ())),
                                    preferred_element_type=jnp.float32
                                    ).astype(xhat_ref.dtype)


def _round_up(v, k):
    return ((v + k - 1) // k) * k


def ae_hard_forward(x, W, *, num_layers, step, threshold, twosided, use_bf16=False):
    """x: (B, m, 1), W: (m, p)  ->  (xhat (B, m, 1), zT (B, p, 1))."""
    B, m, _ = x.shape
    p = W.shape[1]
    num_layers = int(num_layers)
    step = float(step)
    threshold = float(threshold)
    twosided = bool(twosided)
    use_bf16 = bool(use_bf16)

    # Lane/sublane-friendly padded shapes (zero padding is exact for this op).
    m_pad = _round_up(m, 128)
    p_pad = _round_up(p, 128)
    B_pad = _round_up(B, 8)

    x2d = x.reshape(B, m).astype(jnp.float32)
    Wf = W.astype(jnp.float32)
    if (B_pad, m_pad) != (B, m):
        x2d = jnp.pad(x2d, ((0, B_pad - B), (0, m_pad - m)))
    if (m_pad, p_pad) != (m, p):
        Wf = jnp.pad(Wf, ((0, m_pad - m), (0, p_pad - p)))

    # Fold A = I - step * W^T W only when it's a FLOP win (p <= 2m) and the
    # layer loop actually runs.  Hoisted: computed ONCE here, not per tile.
    fold_a = (num_layers > 1) and (p_pad <= 2 * m_pad)
    if fold_a:
        wtw = jnp.dot(Wf.T, Wf, preferred_element_type=jnp.float32,
                      precision=lax.Precision.HIGHEST)
        A = jnp.eye(p_pad, dtype=jnp.float32) - step * wtw
    else:
        A = None

    # --- VMEM budgeting + batch-tile selection -------------------------------
    try:
        vmem_cap = int(pltpu.get_tpu_info().vmem_capacity_bytes)
    except Exception:
        vmem_cap = 64 << 20            # conservative (v7x) if not queryable
    budget = vmem_cap - (8 << 20)

    const_bytes = 4 * (m_pad * p_pad + (p_pad * p_pad if fold_a else 0))

    def footprint(tb):
        io = 4 * (2 * tb * m_pad + 2 * tb * m_pad + 2 * tb * p_pad)   # dbl-buffered X, xhat, Z
        temps = 4 * tb * (3 * p_pad + 2 * m_pad)                      # C, Z carry, matmul temps
        return const_bytes + io + temps

    # Candidates: whole (padded) batch first when small, then divisors of B_pad.
    # Capping at 512 keeps n_tiles >= 2 for large batches (v7x megacore sharding).
    cands = [c for c in (512, 256, 128, 64, 32, 16, 8)
             if c < B_pad and B_pad % c == 0]
    if B_pad <= 512:
        cands = [B_pad] + cands
    tb = cands[-1] if cands else B_pad
    for c in cands:
        if footprint(c) <= budget:
            tb = c
            break
    n_tiles = B_pad // tb

    vmem_limit = int(max(32 << 20,
                         min(footprint(tb) + (16 << 20), vmem_cap - (4 << 20))))

    # --- Cost estimate (advisory) --------------------------------------------
    flops_row = 2 * m_pad * p_pad                                # decode
    if num_layers > 0:
        flops_row += 2 * m_pad * p_pad                           # C = X @ W
        per_layer = 2 * p_pad * p_pad if fold_a else 4 * m_pad * p_pad
        flops_row += (num_layers - 1) * per_layer
    bytes_accessed = 4 * (B_pad * (2 * m_pad + p_pad) + m_pad * p_pad
                          + (p_pad * p_pad if fold_a else 0))
    cost = pl.CostEstimate(flops=B_pad * flops_row, transcendentals=0,
                           bytes_accessed=bytes_accessed)

    kernel = functools.partial(
        _ae_hard_kernel, num_layers=num_layers, step=step, threshold=threshold,
        twosided=twosided, fold_a=fold_a, use_bf16=use_bf16)

    # Resident constants: single VMEM copy, no double-buffering.
    const_spec = pl.BlockSpec(memory_space=pltpu.MemorySpace.VMEM)
    in_specs = [const_spec] + ([const_spec] if fold_a else []) + [
        pl.BlockSpec((tb, m_pad), lambda i: (i, 0)),             # X tiled over batch
    ]
    operands = (Wf, A, x2d) if fold_a else (Wf, x2d)

    xhat2d, z2d = pl.pallas_call(
        kernel,
        out_shape=(jax.ShapeDtypeStruct((B_pad, m_pad), jnp.float32),
                   jax.ShapeDtypeStruct((B_pad, p_pad), jnp.float32)),
        grid=(n_tiles,),
        in_specs=in_specs,
        out_specs=(pl.BlockSpec((tb, m_pad), lambda i: (i, 0)),   # xhat
                   pl.BlockSpec((tb, p_pad), lambda i: (i, 0))),  # z
        compiler_params=pltpu.CompilerParams(
            dimension_semantics=("parallel",),
            vmem_limit_bytes=vmem_limit),
        cost_estimate=cost,
    )(*operands)

    return (xhat2d[:B, :m].reshape(B, m, 1),
            z2d[:B, :p].reshape(B, p, 1))


def _reference_forward(x, W, *, num_layers, step, threshold, twosided):
    """Pure-JAX mirror of the PyTorch module (f32, highest matmul precision)."""
    B, m, _ = x.shape
    p = W.shape[1]
    X = x.reshape(B, m).astype(jnp.float32)
    Wf = W.astype(jnp.float32)
    Z = jnp.zeros((B, p), jnp.float32)

    def nonlin(z):
        if twosided:
            return jnp.where(jnp.abs(z) > threshold, z, 0.0)
        return jnp.where(z > threshold, z, 0.0)

    hi = lax.Precision.HIGHEST
    for _ in range(num_layers):
        res = jnp.matmul(Z, Wf.T, precision=hi) - X
        grad = jnp.matmul(res, Wf, precision=hi)
        Z = nonlin(Z - step * grad)
    xhat = jnp.matmul(Z, Wf.T, precision=hi)
    return xhat.reshape(B, m, 1), Z.reshape(B, p, 1)


if __name__ == "__main__":
    def run_case(key, *, B, m, p, num_layers, step, threshold, twosided):
        kw, kx = jax.random.split(key)
        # W = randn(m, p) with unit-L2 columns (F.normalize(W, p=2, dim=0)).
        W = jax.random.normal(kw, (m, p), dtype=jnp.float32)
        W = W / jnp.maximum(jnp.linalg.norm(W, axis=0, keepdims=True), 1e-12)
        x = jax.random.normal(kx, (B, m, 1), dtype=jnp.float32)

        xhat, zT = ae_hard_forward(x, W, num_layers=num_layers, step=step,
                                   threshold=threshold, twosided=twosided)
        xhat, zT = jax.block_until_ready((xhat, zT))

        xr, zr = _reference_forward(x, W, num_layers=num_layers, step=step,
                                    threshold=threshold, twosided=twosided)
        assert xhat.shape == (B, m, 1) and zT.shape == (B, p, 1)
        assert jnp.allclose(xhat, xr, atol=1e-4, rtol=1e-4), "xhat mismatch"
        assert jnp.allclose(zT, zr, atol=1e-4, rtol=1e-4), "zT mismatch"

    key = jax.random.PRNGKey(0)
    k1, k2, k3 = jax.random.split(key, 3)

    # Folded-A path (p_pad <= 2*m_pad), twosided hard threshold.
    run_case(k1, B=8, m=16, p=32, num_layers=4, step=0.1, threshold=0.1,
             twosided=True)
    # One-sided Threshold path.
    run_case(k2, B=8, m=16, p=32, num_layers=4, step=0.1, threshold=0.1,
             twosided=False)
    # Overcomplete regime (p_pad > 2*m_pad): per-layer two-matmul path, no (p,p) matrix.
    run_case(k3, B=16, m=16, p=300, num_layers=3, step=0.02, threshold=0.05,
             twosided=True)

    print("KERNEL_OK")
</pallas_src>

<mosaic_0001>
module attributes {stable_mosaic.version = 11 : i64} {
  func.func @_ae_hard_kernel(%arg0: i32, %arg1: memref<128x128xf32, #tpu.memory_space<vmem>>, %arg2: memref<128x128xf32, #tpu.memory_space<vmem>>, %arg3: memref<8x128xf32, #tpu.memory_space<vmem>>, %arg4: memref<8x128xf32, #tpu.memory_space<vmem>>, %arg5: memref<8x128xf32, #tpu.memory_space<vmem>>) attributes {dimension_semantics = [#tpu.dimension_semantics<parallel>], iteration_bounds = array<i64: 1>, scalar_prefetch = 0 : i64, scratch_operands = 0 : i64, tpu.core_type = #tpu.core_type<tc>, window_params = [{pipeline_mode = #tpu.pipeline_mode<synchronous>, transform_indices = @transform_0, window_bounds = array<i64: 128, 128>}, {pipeline_mode = #tpu.pipeline_mode<synchronous>, transform_indices = @transform_1, window_bounds = array<i64: 128, 128>}, {transform_indices = @transform_2, window_bounds = array<i64: 8, 128>}, {transform_indices = @transform_3, window_bounds = array<i64: 8, 128>}, {transform_indices = @transform_4, window_bounds = array<i64: 8, 128>}]} {
    %c0 = arith.constant 0 : index
    %c0_0 = arith.constant 0 : index
    %0 = vector.load %arg1[%c0, %c0_0] : memref<128x128xf32, #tpu.memory_space<vmem>>, vector<128x128xf32>
    %c0_1 = arith.constant 0 : index
    %c0_2 = arith.constant 0 : index
    %1 = vector.load %arg3[%c0_1, %c0_2] : memref<8x128xf32, #tpu.memory_space<vmem>>, vector<8x128xf32>
    %cst = arith.constant dense<0.000000e+00> : vector<8x128xf32>
    %2 = tpu.matmul %1, %0, %cst {dimension_numbers = #tpu.dot_dimension_numbers<[1], [0], [0], [1], [0, 0, 1, 1], [], []>} : vector<8x128xf32>, vector<128x128xf32>, vector<8x128xf32> -> vector<8x128xf32>
    %cst_3 = arith.constant 1.000000e-01 : f32
    %3 = vector.broadcast %cst_3 : f32 to vector<8x128xf32>
    %4 = arith.mulf %3, %2 : vector<8x128xf32>
    %5 = math.absf %4 : vector<8x128xf32>
    %cst_4 = arith.constant 1.000000e-01 : f32
    %6 = vector.broadcast %cst_4 : f32 to vector<8x128xf32>
    %7 = arith.cmpf ogt, %5, %6 : vector<8x128xf32>
    %cst_5 = arith.constant 0.000000e+00 : f32
    %8 = vector.broadcast %cst_5 : f32 to vector<8x128xf32>
    %9 = arith.select %7, %4, %8 : vector<8x128xi1>, vector<8x128xf32>
    %c0_6 = arith.constant 0 : index
    %c0_7 = arith.constant 0 : index
    %10 = vector.load %arg2[%c0_6, %c0_7] : memref<128x128xf32, #tpu.memory_space<vmem>>, vector<128x128xf32>
    %c0_i32 = arith.constant 0 : i32
    %cst_8 = arith.constant dense<0.000000e+00> : vector<8x128xf32>
    %11 = tpu.matmul %9, %10, %cst_8 {dimension_numbers = #tpu.dot_dimension_numbers<[1], [0], [0], [1], [0, 0, 1, 1], [], []>} : vector<8x128xf32>, vector<128x128xf32>, vector<8x128xf32> -> vector<8x128xf32>
    %12 = arith.addf %11, %4 : vector<8x128xf32>
    %13 = math.absf %12 : vector<8x128xf32>
    %cst_9 = arith.constant 1.000000e-01 : f32
    %14 = vector.broadcast %cst_9 : f32 to vector<8x128xf32>
    %15 = arith.cmpf ogt, %13, %14 : vector<8x128xf32>
    %cst_10 = arith.constant 0.000000e+00 : f32
    %16 = vector.broadcast %cst_10 : f32 to vector<8x128xf32>
    %17 = arith.select %15, %12, %16 : vector<8x128xi1>, vector<8x128xf32>
    %c1_i32 = arith.constant 1 : i32
    %cst_11 = arith.constant dense<0.000000e+00> : vector<8x128xf32>
    %18 = tpu.matmul %17, %10, %cst_11 {dimension_numbers = #tpu.dot_dimension_numbers<[1], [0], [0], [1], [0, 0, 1, 1], [], []>} : vector<8x128xf32>, vector<128x128xf32>, vector<8x128xf32> -> vector<8x128xf32>
    %19 = arith.addf %18, %4 : vector<8x128xf32>
    %20 = math.absf %19 : vector<8x128xf32>
    %cst_12 = arith.constant 1.000000e-01 : f32
    %21 = vector.broadcast %cst_12 : f32 to vector<8x128xf32>
    %22 = arith.cmpf ogt, %20, %21 : vector<8x128xf32>
    %cst_13 = arith.constant 0.000000e+00 : f32
    %23 = vector.broadcast %cst_13 : f32 to vector<8x128xf32>
    %24 = arith.select %22, %19, %23 : vector<8x128xi1>, vector<8x128xf32>
    %c2_i32 = arith.constant 2 : i32
    %cst_14 = arith.constant dense<0.000000e+00> : vector<8x128xf32>
    %25 = tpu.matmul %24, %10, %cst_14 {dimension_numbers = #tpu.dot_dimension_numbers<[1], [0], [0], [1], [0, 0, 1, 1], [], []>} : vector<8x128xf32>, vector<128x128xf32>, vector<8x128xf32> -> vector<8x128xf32>
    %26 = arith.addf %25, %4 : vector<8x128xf32>
    %27 = math.absf %26 : vector<8x128xf32>
    %cst_15 = arith.constant 1.000000e-01 : f32
    %28 = vector.broadcast %cst_15 : f32 to vector<8x128xf32>
    %29 = arith.cmpf ogt, %27, %28 : vector<8x128xf32>
    %cst_16 = arith.constant 0.000000e+00 : f32
    %30 = vector.broadcast %cst_16 : f32 to vector<8x128xf32>
    %31 = arith.select %29, %26, %30 : vector<8x128xi1>, vector<8x128xf32>
    %c0_17 = arith.constant 0 : index
    %c0_18 = arith.constant 0 : index
    %32 = vector.load %arg5[%c0_17, %c0_18] : memref<8x128xf32, #tpu.memory_space<vmem>>, vector<8x128xf32>
    tpu.vector_store %arg5[%c0_17, %c0_18], %31 {strides = array<i32>} : memref<8x128xf32, #tpu.memory_space<vmem>>, vector<8x128xf32>,
    %cst_19 = arith.constant dense<0.000000e+00> : vector<8x128xf32>
    %33 = tpu.matmul %31, %0, %cst_19 {dimension_numbers = #tpu.dot_dimension_numbers<[1], [1], [0], [0], [0, 0, 1, 0], [], []>} : vector<8x128xf32>, vector<128x128xf32>, vector<8x128xf32> -> vector<8x128xf32>
    %c0_20 = arith.constant 0 : index
    %c0_21 = arith.constant 0 : index
    %34 = vector.load %arg4[%c0_20, %c0_21] : memref<8x128xf32, #tpu.memory_space<vmem>>, vector<8x128xf32>
    tpu.vector_store %arg4[%c0_20, %c0_21], %33 {strides = array<i32>} : memref<8x128xf32, #tpu.memory_space<vmem>>, vector<8x128xf32>,
    return
  }
  func.func @transform_0(%arg0: i32) -> (i32, i32) {
    %c0_i32 = arith.constant 0 : i32
    %c0_i32_0 = arith.constant 0 : i32
    %c0_i32_1 = arith.constant 0 : i32
    return %c0_i32, %c0_i32_0 : i32, i32
  }
  func.func @transform_1(%arg0: i32) -> (i32, i32) {
    %c0_i32 = arith.constant 0 : i32
    %c0_i32_0 = arith.constant 0 : i32
    %c0_i32_1 = arith.constant 0 : i32
    return %c0_i32, %c0_i32_0 : i32, i32
  }
  func.func @transform_2(%arg0: i32) -> (i32, i32) {
    %c0_i32 = arith.constant 0 : i32
    %c0_i32_0 = arith.constant 0 : i32
    return %arg0, %c0_i32 : i32, i32
  }
  func.func @transform_3(%arg0: i32) -> (i32, i32) {
    %c0_i32 = arith.constant 0 : i32
    %c0_i32_0 = arith.constant 0 : i32
    return %arg0, %c0_i32 : i32, i32
  }
  func.func @transform_4(%arg0: i32) -> (i32, i32) {
    %c0_i32 = arith.constant 0 : i32
    %c0_i32_0 = arith.constant 0 : i32
    return %arg0, %c0_i32 : i32, i32
  }
}

</mosaic_0001>

<bundles_post_ra>
// kernel: tpu_custom_call.1
= control target key start
LH: loop header
LB: loop body
LE: loop exit
PB: predicated region body
PF: predicated region fallthrough
CT: control target
= control target key end

     0   :  { %10 = vsyncpa [#allocation3], 0  ;;  %s1201_s0 = inlined_call_operand.hbm [shape: f32[128,128], index: 0, kind: input, shape index: {}]   ;;  %s1202_s1 = inlined_call_operand.hbm [shape: f32[128,128], index: 1, kind: input, shape index: {}]   ;;  %s1203_s2 = inlined_call_operand.hbm [shape: f32[8,128], index: 2, kind: input, shape index: {}]   ;;  %s1204_s3 = inlined_call_operand.hbm [shape: f32[8,128], index: 3, kind: output, shape index: {0}]   ;;  %s1205_s4 = inlined_call_operand.hbm [shape: f32[8,128], index: 4, kind: output, shape index: {1}]  }
   0x1   :  { %11 = vsyncpa [#allocation6], 0 }
   0x2   :  { %12 = vsyncpa [#allocation4], 0 }
   0x3   :  { %13 = vsyncpa [#allocation10], 0  ;;  %s997_s15 = smov [#allocation5]   ;;  %s998_s17 = smov [#allocation2]  }
   0x4   :  { %s31_s16 = sshll.u32 %s997_s15, 4  ;;  %s19_s18 = sshll.u32 %s998_s17, 4  ;;  %s32_s16 = int_to_ptr.vmem [resolvable:$true] %s31_s16  ;;  %s1032_s18 = int_to_ptr.vmem [resolvable:$true] %s19_s18 }
   0x5   :  { %s879_s21 = scalar_lea.hbm %s1202_s1, 2048 }
   0x6   :  { %p880_p0 = scmp.ne.s32.totalorder %s1202_s1, %s879_s21  ;;  %p883_p1 = scmp.lt.u32.totalorder %s879_s21, %s1202_s1 }
   0x8   :  { %p885_p2 = pnand %p883_p1, %p880_p0 }
   0xa   :  { %888 = shalt.err (!%p885_p2)
}
   0xb   :  { %s889_s26 = scalar_lea.vmem %s32_s16, 2048  ;;  %p894_p4 = scmp.lt.s32.totalorder %s32_s16, %s32_s16 }
   0xc   :  { %p890_p3 = scmp.ne.s32.totalorder %s32_s16, %s889_s26  ;;  %p895_p5 = scmp.lt.s32.totalorder %s889_s26, %s889_s26 }
   0xe   :  { %p896_p6 = por %p895_p5, %p894_p4 }
  0x10   :  { %p897_p7 = pnand %p896_p6, %p890_p3 }
  0x12   :  { %900 = shalt.err (!%p897_p7)
}
  0x13   :  { %s999_s27 = smov 128   ;;  %s1000_s28 = smov 8  }
  0x14   :  { %37 = dma.hbm_to_vmem [thread:$0]  %s1202_s1, 2048, %s32_s16, [#allocation6], %s999_s27, %s999_s27, %s1000_s28  }
  0x15   :  { %s901_s7 = scalar_lea.hbm %s1201_s0, 2048 }
  0x16   :  { %p902_p8 = scmp.ne.s32.totalorder %s1201_s0, %s901_s7  ;;  %p905_p9 = scmp.lt.u32.totalorder %s901_s7, %s1201_s0 }
  0x18   :  { %p907_p10 = pnand %p905_p9, %p902_p8 }
  0x1a   :  { %910 = shalt.err (!%p907_p10)
}
  0x1b   :  { %s911_s12 = scalar_lea.vmem %s1032_s18, 2048  ;;  %p916_p12 = scmp.lt.s32.totalorder %s1032_s18, %s1032_s18 }
  0x1c   :  { %p912_p11 = scmp.ne.s32.totalorder %s1032_s18, %s911_s12  ;;  %p917_p13 = scmp.lt.s32.totalorder %s911_s12, %s911_s12 }
  0x1e   :  { %p918_p0 = por %p917_p13, %p916_p12 }
  0x20   :  { %p919_p1 = pnand %p918_p0, %p912_p11 }
  0x22   :  { %922 = shalt.err (!%p919_p1)
}
  0x23   :  { %25 = dma.hbm_to_vmem [thread:$0]  %s1201_s0, 2048, %s1032_s18, [#allocation3], %s999_s27, %s999_s27, %s1000_s28  }
  0x24   :  { %s1001_s14 = smov [#allocation7]   ;;  %s923_s19 = scalar_lea.hbm %s1203_s2, 128 }
  0x25   :  { %s44_s15 = sshll.u32 %s1001_s14, 4  ;;  %p924_p2 = scmp.ne.s32.totalorder %s1203_s2, %s923_s19  ;;  %s45_s15 = int_to_ptr.vmem [resolvable:$true] %s44_s15 }
  0x26   :  { %p927_p3 = scmp.lt.u32.totalorder %s923_s19, %s1203_s2 }
  0x28   :  { %p929_p4 = pnand %p927_p3, %p924_p2 }
  0x2a   :  { %932 = shalt.err (!%p929_p4)
}
  0x2b   :  { %s933_s24 = scalar_lea.vmem %s45_s15, 128  ;;  %p938_p6 = scmp.lt.s32.totalorder %s45_s15, %s45_s15 }
  0x2c   :  { %p934_p5 = scmp.ne.s32.totalorder %s45_s15, %s933_s24  ;;  %p939_p7 = scmp.lt.s32.totalorder %s933_s24, %s933_s24 }
  0x2e   :  { %p940_p8 = por %p939_p7, %p938_p6 }
  0x30   :  { %p941_p9 = pnand %p940_p8, %p934_p5 }
  0x32   :  { %944 = shalt.err (!%p941_p9)
}
  0x33   :  { %47 = dma.hbm_to_vmem [thread:$0]  %s1203_s2, 128, %s45_s15, [#allocation6]  }
  0x34   :  { %989 = dma.done.wait [#allocation3], 2048  }
  0x35   :  { %990 = vsyncadd [#allocation3], 4294965248 }
  0x36   :  { %991 = dma.done.wait [#allocation6], 2176  }
  0x37   :  { %992 = vsyncadd [#allocation6], 4294965120  ;;  %v1002_v0 = vmov 0.0|0.0   ;;  %vm1003_vm0 = vmmov 0   ;;  %v1004_v1 = vmov 0.0   ;;  %v57_v2 = vld [vmem:[#allocation2] sm:$0xff] }
  0x38   :  { %749 = vmatprep.subr.bf16.mxu1 %v1002_v0  ;;  %606 = vmatprep.mubr.msk.f32.mxu1 %vm1003_vm0, %v1004_v1  ;;  %v58_v3 = vld [vmem:[#allocation2 + $0x8] sm:$0xff]  ;;  %v59_v4 = vld [vmem:[#allocation2 + $0x10] sm:$0xff]  ;;  %v60_v6 = vld [vmem:[#allocation2 + $0x18] sm:$0xff]  ;;  %s1005_s2 = smov [#allocation9]  }
  0x39   :  { %797 = vmatprep.subr.bf16.mxu0 %v1002_v0  ;;  %676 = vmatprep.mubr.msk.f32.mxu0 %vm1003_vm0, %v1004_v1  ;;  %v1081_v5 = vpack.c.bf16 %v58_v3, %v57_v2  ;;  %v1084_v7 = vpack.c.bf16 %v60_v6, %v59_v4  ;;  %v61_v8 = vld [vmem:[#allocation2 + $0x20] sm:$0xff]  ;;  %v62_v9 = vld [vmem:[#allocation2 + $0x28] sm:$0xff]  ;;  %v63_v13 = vld [vmem:[#allocation2 + $0x30] sm:$0xff]  ;;  %s471_s25 = sshll.u32 %s1005_s2, 4  ;;  %s472_s25 = int_to_ptr.vmem [resolvable:$true] %s471_s25 }
  0x3a   :  { %v148_v10 = vld [vmem:[#allocation5] sm:$0xff]  ;;  %v149_v11 = vld [vmem:[#allocation5 + $0x8] sm:$0xff]  ;;  %v1088_v12 = vpack.c.bf16 %v62_v9, %v61_v8  ;;  %v64_v15 = vld [vmem:[#allocation2 + $0x38] sm:$0xff]  ;;  %s945_s26 = scalar_lea.vmem %s472_s25, 128  ;;  %p950_p11 = scmp.lt.s32.totalorder %s472_s25, %s472_s25 }
  0x3b   :  { %751 = vmatpush3.bf16.msra.mxu1 %v1081_v5  ;;  %v1090_v14 = vpack.c.bf16 %v149_v11, %v148_v10  ;;  %v150_v16 = vld [vmem:[#allocation5 + $0x10] sm:$0xff]  ;;  %v151_v17 = vld [vmem:[#allocation5 + $0x18] sm:$0xff]  ;;  %v1096_v18 = vpack.c.bf16 %v64_v15, %v63_v13  ;;  %v65_v19 = vld [vmem:[#allocation2 + $0x40] sm:$0xff]  ;;  %p946_p10 = scmp.ne.s32.totalorder %s472_s25, %s945_s26  ;;  %p951_p12 = scmp.lt.s32.totalorder %s945_s26, %s945_s26 }
  0x3c   :  { %752 = vmatprep.subr.bf16.mxu1 %v1002_v0  ;;  %v1098_v20 = vpack.c.bf16 %v151_v17, %v150_v16  ;;  %v66_v21 = vld [vmem:[#allocation2 + $0x48] sm:$0xff]  ;;  %v152_v22 = vld [vmem:[#allocation5 + $0x20] sm:$0xff]  ;;  %v67_v25 = vld [vmem:[#allocation2 + $0x50] sm:$0xff] }
  0x3d   :  { %799 = vmatpush3.bf16.msra.mxu0 %v1090_v14  ;;  %v153_v23 = vld [vmem:[#allocation5 + $0x28] sm:$0xff]  ;;  %v1104_v24 = vpack.c.bf16 %v66_v21, %v65_v19  ;;  %v68_v27 = vld [vmem:[#allocation2 + $0x58] sm:$0xff]  ;;  %v154_v28 = vld [vmem:[#allocation5 + $0x30] sm:$0xff]  ;;  %p952_p13 = por %p951_p12, %p950_p11 }
  0x3e   :  { %800 = vmatprep.subr.bf16.mxu0 %v1002_v0  ;;  %v1106_v26 = vpack.c.bf16 %v153_v23, %v152_v22  ;;  %v155_v29 = vld [vmem:[#allocation5 + $0x38] sm:$0xff]  ;;  %v1112_v30 = vpack.c.bf16 %v68_v27, %v67_v25  ;;  %v69_v31 = vld [vmem:[#allocation2 + $0x60] sm:$0xff]  ;;  %v70_v33 = vld [vmem:[#allocation2 + $0x68] sm:$0xff] }
  0x3f   :  { %754 = vmatpush3.bf16.msra.mxu1 %v1084_v7  ;;  %v1114_v32 = vpack.c.bf16 %v155_v29, %v154_v28  ;;  %v156_v34 = vld [vmem:[#allocation5 + $0x40] sm:$0xff]  ;;  %v157_v35 = vld [vmem:[#allocation5 + $0x48] sm:$0xff]  ;;  %v1120_v36 = vpack.c.bf16 %v70_v33, %v69_v31  ;;  %v71_v37 = vld [vmem:[#allocation2 + $0x70] sm:$0xff]  ;;  %p953_p0 = pnand %p952_p13, %p946_p10 }
  0x40   :  { %755 = vmatprep.subr.bf16.mxu1 %v1002_v0  ;;  %v786_v38 = vpack.c.bf16 %v157_v35, %v156_v34  ;;  %v72_v39 = vld [vmem:[#allocation2 + $0x78] sm:$0xff]  ;;  %v158_v40 = vld [vmem:[#allocation5 + $0x50] sm:$0xff]  ;;  %v160_v44 = vld [vmem:[#allocation5 + $0x60] sm:$0xff] }
  0x41   :  { %802 = vmatpush3.bf16.msra.mxu0 %v1098_v20  ;;  %v159_v41 = vld [vmem:[#allocation5 + $0x58] sm:$0xff]  ;;  %v1125_v42 = vpack.c.bf16 %v72_v39, %v71_v37  ;;  %v161_v45 = vld [vmem:[#allocation5 + $0x68] sm:$0xff]  ;;  %v73_v46 = vld [vmem:[#allocation7] sm:$0xff] }
  0x42   :  { %803 = vmatprep.subr.bf16.mxu0 %v1002_v0  ;;  %v789_v43 = vpack.c.bf16 %v159_v41, %v158_v40  ;;  %v792_v47 = vpack.c.bf16 %v161_v45, %v160_v44  ;;  %v162_v48 = vld [vmem:[#allocation5 + $0x70] sm:$0xff]  ;;  %v163_v49 = vld [vmem:[#allocation5 + $0x78] sm:$0xff] }
  0x43   :  { %757 = vmatpush3.bf16.msra.mxu1 %v1088_v12  ;;  %v795_v50 = vpack.c.bf16 %v163_v49, %v162_v48 }
  0x44   :  { %758 = vmatprep.subr.bf16.mxu1 %v1002_v0 }
  0x45   :  { %805 = vmatpush3.bf16.msra.mxu0 %v1106_v26 }
  0x46   :  { %806 = vmatprep.subr.bf16.mxu0 %v1002_v0 }
  0x47   :  { %760 = vmatpush3.bf16.msra.mxu1 %v1096_v18 }
  0x48   :  { %761 = vmatprep.subr.bf16.mxu1 %v1002_v0 }
  0x49   :  { %808 = vmatpush3.bf16.msra.mxu0 %v1114_v32 }
  0x4a   :  { %809 = vmatprep.subr.bf16.mxu0 %v1002_v0 }
  0x4b   :  { %763 = vmatpush3.bf16.msra.mxu1 %v1104_v24 }
  0x4c   :  { %764 = vmatprep.subr.bf16.mxu1 %v1002_v0 }
  0x4d   :  { %811 = vmatpush3.bf16.msra.mxu0 %v786_v38 }
  0x4e   :  { %812 = vmatprep.subr.bf16.mxu0 %v1002_v0 }
  0x4f   :  { %766 = vmatpush3.bf16.msra.mxu1 %v1112_v30 }
  0x50   :  { %767 = vmatprep.subr.bf16.mxu1 %v1002_v0 }
  0x51   :  { %814 = vmatpush3.bf16.msra.mxu0 %v789_v43 }
  0x52   :  { %815 = vmatprep.subr.bf16.mxu0 %v1002_v0 }
  0x53   :  { %769 = vmatpush3.bf16.msra.mxu1 %v1120_v36 }
  0x54   :  { %770 = vmatprep.subr.bf16.mxu1 %v1002_v0 }
  0x55   :  { %817 = vmatpush3.bf16.msra.mxu0 %v792_v47 }
  0x56   :  { %818 = vmatprep.subr.bf16.mxu0 %v1002_v0 }
  0x57   :  { %772 = vmatpush3.bf16.msra.mxu1 %v1125_v42 }
  0x58   :  { %773 = vmatprep.subr.bf16.mxu1 %v1002_v0 }
  0x59   :  { %820 = vmatpush3.bf16.msra.mxu0 %v795_v50 }
  0x5a   :  { %607 = vmatmul.mubr.f32.vlgmr.msra.gmra.mrb[0].mxu1 %v73_v46  ;;  %845 = vmatprep.subr.bf16.mxu0 %v1002_v0 }
  0x5b   :  { %775 = vmatpush3.bf16.msra.mxu1 %v1090_v14  ;;  %641 = vmatprep.mubr.msk.f32.mxu1 %vm1003_vm0, %v1004_v1 }
  0x5c   :  { %776 = vmatprep.subr.bf16.mxu1 %v1002_v0 }
  0x5f   :  { %778 = vmatpush3.bf16.msra.mxu1 %v1098_v20 }
  0x60   :  { %779 = vmatprep.subr.bf16.mxu1 %v1002_v0 }
  0x63   :  { %781 = vmatpush3.bf16.msra.mxu1 %v1106_v26 }
  0x64   :  { %782 = vmatprep.subr.bf16.mxu1 %v1002_v0 }
  0x67   :  { %784 = vmatpush3.bf16.msra.mxu1 %v1114_v32 }
  0x68   :  { %785 = vmatprep.subr.bf16.mxu1 %v1002_v0 }
  0x6b   :  { %787 = vmatpush3.bf16.msra.mxu1 %v786_v38 }
  0x6c   :  { %788 = vmatprep.subr.bf16.mxu1 %v1002_v0 }
  0x6f   :  { %790 = vmatpush3.bf16.msra.mxu1 %v789_v43 }
  0x70   :  { %791 = vmatprep.subr.bf16.mxu1 %v1002_v0 }
  0x73   :  { %793 = vmatpush3.bf16.msra.mxu1 %v792_v47 }
  0x74   :  { %794 = vmatprep.subr.bf16.mxu1 %v1002_v0 }
  0x77   :  { %796 = vmatpush3.bf16.msra.mxu1 %v795_v50 }
  0x78   :  { %821 = vmatprep.subr.bf16.mxu1 %v1002_v0 }
 0x12d   :  { %v140_v51 = vpop.f32.mrb[0].mxu1 }
 0x12e   :  { %v144_v52 = vmul.f32 0.1, %v140_v51  ;;  %v608_v53 = vpop.f32.mrb[1].mxu1 }
 0x130   :  { %v145_v54 = vand.u32 2147483647, %v144_v52 }
 0x132   :  { %vm146_vm1 = vcmp.gt.f32.partialorder %v145_v54, 0.1 }
 0x133   :  { %642 = vmatmul.mubr.msk.f32.vlgmr.msra.gmra.mrb[2].mxu1 %vm146_vm1, %v144_v52 }
 0x134   :  { %823 = vmatpush3.bf16.msra.mxu1 %v1090_v14  ;;  %711 = vmatprep.mubr.msk.f32.mxu1 %vm1003_vm0, %v1004_v1 }
 0x135   :  { %824 = vmatprep.subr.bf16.mxu1 %v1002_v0 }
 0x138   :  { %826 = vmatpush3.bf16.msra.mxu1 %v1098_v20 }
 0x139   :  { %827 = vmatprep.subr.bf16.mxu1 %v1002_v0 }
 0x13c   :  { %829 = vmatpush3.bf16.msra.mxu1 %v1106_v26 }
 0x13d   :  { %830 = vmatprep.subr.bf16.mxu1 %v1002_v0 }
 0x140   :  { %832 = vmatpush3.bf16.msra.mxu1 %v1114_v32 }
 0x141   :  { %833 = vmatprep.subr.bf16.mxu1 %v1002_v0 }
 0x144   :  { %835 = vmatpush3.bf16.msra.mxu1 %v786_v38 }
 0x145   :  { %836 = vmatprep.subr.bf16.mxu1 %v1002_v0 }
 0x148   :  { %838 = vmatpush3.bf16.msra.mxu1 %v789_v43 }
 0x149   :  { %839 = vmatprep.subr.bf16.mxu1 %v1002_v0 }
 0x14c   :  { %841 = vmatpush3.bf16.msra.mxu1 %v792_v47 }
 0x14d   :  { %842 = vmatprep.subr.bf16.mxu1 %v1002_v0 }
 0x150   :  { %844 = vmatpush3.bf16.msra.mxu1 %v795_v50 }
 0x206   :  { %v230_v55 = vpop.f32.mrb[2].mxu1 }
 0x207   :  { %v231_v56 = vadd.f32 %v230_v55, %v144_v52  ;;  %v643_v57 = vpop.f32.mrb[3].mxu1 }
 0x209   :  { %v234_v58 = vand.u32 2147483647, %v231_v56 }
 0x20b   :  { %vm235_vm2 = vcmp.gt.f32.partialorder %v234_v58, 0.1 }
 0x20c   :  { %677 = vmatmul.mubr.msk.f32.vlgmr.msra.gmra.mrb[0].mxu0 %vm235_vm2, %v231_v56 }
 0x20d   :  { %847 = vmatpush3.bf16.xpose.msra.mxu0 %v1081_v5  ;;  %746 = vmatprep.mubr.msk.f32.mxu0 %vm1003_vm0, %v1004_v1 }
 0x20e   :  { %848 = vmatprep.subr.bf16.mxu0 %v1002_v0 }
 0x215   :  { %850 = vmatpush3.bf16.xpose.msra.mxu0 %v1084_v7 }
 0x216   :  { %851 = vmatprep.subr.bf16.mxu0 %v1002_v0 }
 0x21d   :  { %853 = vmatpush3.bf16.xpose.msra.mxu0 %v1088_v12 }
 0x21e   :  { %854 = vmatprep.subr.bf16.mxu0 %v1002_v0 }
 0x225   :  { %856 = vmatpush3.bf16.xpose.msra.mxu0 %v1096_v18 }
 0x226   :  { %857 = vmatprep.subr.bf16.mxu0 %v1002_v0 }
 0x22d   :  { %859 = vmatpush3.bf16.xpose.msra.mxu0 %v1104_v24 }
 0x22e   :  { %860 = vmatprep.subr.bf16.mxu0 %v1002_v0 }
 0x235   :  { %862 = vmatpush3.bf16.xpose.msra.mxu0 %v1112_v30 }
 0x236   :  { %863 = vmatprep.subr.bf16.mxu0 %v1002_v0 }
 0x23d   :  { %865 = vmatpush3.bf16.xpose.msra.mxu0 %v1120_v36 }
 0x23e   :  { %866 = vmatprep.subr.bf16.mxu0 %v1002_v0 }
 0x245   :  { %868 = vmatpush3.bf16.xpose.msra.mxu0 %v1125_v42 }
 0x2df   :  { %v303_v59 = vpop.f32.mrb[0].mxu0 }
 0x2e0   :  { %v304_v60 = vadd.f32 %v303_v59, %v144_v52  ;;  %v678_v61 = vpop.f32.mrb[1].mxu0 }
 0x2e2   :  { %v307_v62 = vand.u32 2147483647, %v304_v60 }
 0x2e4   :  { %vm308_vm3 = vcmp.gt.f32.partialorder %v307_v62, 0.1 }
 0x2e5   :  { %712 = vmatmul.mubr.msk.f32.vlgmr.msra.gmra.mrb[4].mxu1 %vm308_vm3, %v304_v60 }
 0x3b8   :  { %v376_v63 = vpop.f32.mrb[4].mxu1 }
 0x3b9   :  { %v377_v1 = vadd.f32 %v376_v63, %v144_v52  ;;  %v713_v2 = vpop.f32.mrb[5].mxu1 }
 0x3bb   :  { %v380_v3 = vand.u32 2147483647, %v377_v1 }
 0x3bd   :  { %vm381_vm4 = vcmp.gt.f32.partialorder %v380_v3, 0.1 }
 0x3be   :  { %747 = vmatmul.mubr.msk.f32.vlgmr.msra.gmra.mrb[2].mxu0 %vm381_vm4, %v377_v1  ;;  %v382_v4 = vsel %vm381_vm4, %v377_v1, 0.0 }
 0x3bf   :  { %383 = vst [vmem:[#allocation9] sm:$0xff] %v382_v4 }
 0x3c0   :  { %956 = shalt.err (!%p953_p0)
}
 0x3c1   :  { %s957_s29 = scalar_lea.hbm %s1205_s4, 128 }
 0x3c2   :  { %p958_p1 = scmp.ne.s32.totalorder %s1205_s4, %s957_s29  ;;  %p961_p2 = scmp.lt.u32.totalorder %s957_s29, %s1205_s4 }
 0x3c4   :  { %p963_p3 = pnand %p961_p2, %p958_p1 }
 0x3c6   :  { %966 = shalt.err (!%p963_p3)
}
 0x3c7   :  { %474 = dma.vmem_to_hbm [thread:$0]  %s472_s25, 128, %s1205_s4, [#allocation10]  }
 0x3c8   :  { %s1006_s10 = smov [#allocation8]  }
 0x3c9   :  { %s461_s11 = sshll.u32 %s1006_s10, 4  ;;  %s462_s11 = int_to_ptr.vmem [resolvable:$true] %s461_s11 }
 0x3ca   :  { %s967_s12 = scalar_lea.vmem %s462_s11, 128  ;;  %p972_p5 = scmp.lt.s32.totalorder %s462_s11, %s462_s11 }
 0x3cb   :  { %p968_p4 = scmp.ne.s32.totalorder %s462_s11, %s967_s12  ;;  %p973_p6 = scmp.lt.s32.totalorder %s967_s12, %s967_s12 }
 0x3cd   :  { %p974_p7 = por %p973_p6, %p972_p5 }
 0x3cf   :  { %p975_p8 = pnand %p974_p7, %p968_p4 }
 0x491   :  { %v450_v0 = vpop.f32.mrb[2].mxu0 }
 0x492   :  { %454 = vst [vmem:[#allocation8] sm:$0xff] %v450_v0  ;;  %v748_v5 = vpop.f32.mrb[3].mxu0 }
 0x493   :  { %978 = shalt.err (!%p975_p8)
}
 0x494   :  { %s979_s14 = scalar_lea.hbm %s1204_s3, 128 }
 0x495   :  { %p980_p9 = scmp.ne.s32.totalorder %s1204_s3, %s979_s14  ;;  %p983_p10 = scmp.lt.u32.totalorder %s979_s14, %s1204_s3 }
 0x497   :  { %p985_p11 = pnand %p983_p10, %p980_p9 }
 0x499   :  { %988 = shalt.err (!%p985_p11)
}
 0x49a   :  { %464 = dma.vmem_to_hbm [thread:$0]  %s462_s11, 128, %s1204_s3, [#allocation4]  }
 0x49b   :  { %993 = dma.done.wait [#allocation4], 128  }
 0x49c   :  { %994 = vsyncadd [#allocation4], 4294967168 }
 0x49d   :  { %995 = dma.done.wait [#allocation10], 128  }
 0x49e   :  { %996 = vsyncadd [#allocation10], 4294967168 }
 0x49f   :  { %481 = vsyncpa [#allocation3], 1 }
 0x4a0   :  { %482 = vsyncpa [#allocation6], 1 }
 0x4a1   :  { %483 = vsyncpa [#allocation4], 1 }
 0x4a2   :  { %484 = vsyncpa [#allocation10], 1 }

</bundles_post_ra>
